<compile_context>
chip_gen: v6e
topology: v6e:2x2x1
jax: 0.10.0
libtpu: 0.0.40
codegen_flags: <defaults>
</compile_context>

<pallas_src>
import jax
import jax.numpy as jnp
from jax.experimental import pallas as pl
from jax.experimental.pallas import tpu as pltpu

_LANE = 128


def critic_kernel(x_ref, w1t_ref, b1_ref, w2_ref, b2_ref, o_ref):
    # x_ref  : [OBS, T]  (batch on lanes)      w1t_ref: [H, OBS]
    # b1_ref : [H, 1]                          w2_ref : [1, H]
    # b2_ref : [1]  (SMEM scalar)              o_ref  : [1, T]  (lane-dense)
    x = x_ref[...]                                   # [OBS, T]
    obs = x_ref.shape[0]

    # Layer 1: K = OBS = 4 -> unrolled VPU broadcast-FMAs (MXU would use <3%
    # of its contraction depth).  [H,1] * [1,T] broadcasts to [H,T].
    h = w1t_ref[:, 0:1] * x[0:1, :]
    for k in range(1, obs):
        h = h + w1t_ref[:, k:k + 1] * x[k:k + 1, :]
    # EUP tanh (f32 for v5e compatibility; bf16 here would halve EUP cost on
    # v6e/v7x if the critic's tolerance allows).
    h = jnp.tanh(h + b1_ref[...])                    # [H, T]

    # Layer 2: [1,H] @ [H,T] on the MXU (K=64) -> [1,T] lane-dense directly,
    # no [T,1] -> [1,T] relayout needed.
    o_ref[...] = (
        jnp.dot(w2_ref[...], h, preferred_element_type=jnp.float32) + b2_ref[0]
    )


def network_critic_forward(x, w1, b1, w2, b2, *, b_tile=32768):
    """Pallas forward pass for Network_Critic.

    x : [B, OBS] float32
    w1: [OBS, H], b1: [H], w2: [H, 1], b2: [1]
    returns [B, 1] float32 (value estimate per batch element).

    b_tile: max batch elements per grid step on the tiled path.  At the 32K
    default the per-step VMEM working set is ~12 MiB (h [64, tile] f32 = 8 MiB
    plus double-buffered x/out tiles of ~1 MiB each), safely under the scoped
    limit we request on every generation, including v7x's 64 MiB part.
    """
    B, OBS = x.shape
    H = w1.shape[1]

    # Batch on the 128-lane axis end-to-end.
    x_t = jnp.transpose(x)          # [OBS, B]
    w1_t = jnp.transpose(w1)        # [H, OBS]
    b1_col = b1.reshape(H, 1)       # broadcasts along lanes in-kernel
    w2_row = w2.reshape(1, H)
    b2_1d = b2.reshape(1)

    ce = pl.CostEstimate(
        flops=2 * B * OBS * H + 2 * B * H,
        transcendentals=B * H,
        bytes_accessed=(B * (OBS + 1) + OBS * H + 2 * H + 1) * 4,
    )

    if B <= _LANE:
        # Tiny-batch fast path: whole problem VMEM-resident, no grid
        # bookkeeping (single rollout-step scale).
        out = pl.pallas_call(
            critic_kernel,
            out_shape=jax.ShapeDtypeStruct((1, B), jnp.float32),
            in_specs=[
                pl.BlockSpec(memory_space=pltpu.MemorySpace.VMEM),
                pl.BlockSpec(memory_space=pltpu.MemorySpace.VMEM),
                pl.BlockSpec(memory_space=pltpu.MemorySpace.VMEM),
                pl.BlockSpec(memory_space=pltpu.MemorySpace.VMEM),
                pl.BlockSpec(memory_space=pltpu.MemorySpace.SMEM),
            ],
            out_specs=pl.BlockSpec(memory_space=pltpu.MemorySpace.VMEM),
            cost_estimate=ce,
        )(x_t, w1_t, b1_col, w2_row, b2_1d)
        return out[0, :B].reshape(B, 1)

    # Tiled path: batch axis on lanes, split into >= 2 tiles whenever there is
    # enough work so the "parallel" grid axis can feed both v7x TensorCores.
    max_tile = max(_LANE, (int(b_tile) // _LANE) * _LANE)
    two_way = pl.cdiv(pl.cdiv(B, 2), _LANE) * _LANE
    tile = min(max_tile, two_way)
    num_tiles = pl.cdiv(B, tile)
    b_pad = num_tiles * tile

    # NOTE: x_t is NOT padded -- the last x tile may overhang B; the resulting
    # garbage only reaches output lanes >= B, which are sliced off below.
    out = pl.pallas_call(
        critic_kernel,
        out_shape=jax.ShapeDtypeStruct((1, b_pad), jnp.float32),
        grid=(num_tiles,),
        in_specs=[
            pl.BlockSpec((OBS, tile), lambda i: (0, i)),   # x tile (lane-dense)
            pl.BlockSpec((H, OBS), lambda i: (0, 0)),      # weights: fetched once,
            pl.BlockSpec((H, 1), lambda i: (0, 0)),        # VMEM-resident across grid
            pl.BlockSpec((1, H), lambda i: (0, 0)),
            pl.BlockSpec(memory_space=pltpu.MemorySpace.SMEM),
        ],
        out_specs=pl.BlockSpec((1, tile), lambda i: (0, i)),
        compiler_params=pltpu.CompilerParams(
            dimension_semantics=("parallel",),
            vmem_limit_bytes=32 * 1024 * 1024,
        ),
        cost_estimate=ce,
    )(x_t, w1_t, b1_col, w2_row, b2_1d)

    return out[0, :B].reshape(B, 1)


def init_params(key, nb_obses=4, hidden=64):
    """Deterministic init mimicking nn.Linear's U(-1/sqrt(fan_in), 1/sqrt(fan_in))."""
    k1, k2, k3, k4 = jax.random.split(key, 4)
    bound1 = 1.0 / jnp.sqrt(jnp.float32(nb_obses))
    bound2 = 1.0 / jnp.sqrt(jnp.float32(hidden))
    w1 = jax.random.uniform(k1, (nb_obses, hidden), jnp.float32, -bound1, bound1)
    b1 = jax.random.uniform(k2, (hidden,), jnp.float32, -bound1, bound1)
    w2 = jax.random.uniform(k3, (hidden, 1), jnp.float32, -bound2, bound2)
    b2 = jax.random.uniform(k4, (1,), jnp.float32, -bound2, bound2)
    return w1, b1, w2, b2


if __name__ == "__main__":
    key = jax.random.PRNGKey(0)
    k_x, k_p, k_x2 = jax.random.split(key, 3)

    OBS, H = 4, 64
    w1, b1, w2, b2 = init_params(k_p, nb_obses=OBS, hidden=H)

    def ref_fn(xx):
        return jnp.tanh(xx @ w1 + b1) @ w2 + b2

    # 1) Tiny batch (single rollout-step scale): grid-free fast path.
    B1 = 8
    x1 = jax.random.normal(k_x, (B1, OBS), jnp.float32)
    out1 = jax.block_until_ready(network_critic_forward(x1, w1, b1, w2, b2))
    assert out1.shape == (B1, 1)
    assert jnp.allclose(out1, ref_fn(x1), atol=1e-5), "tiny-batch mismatch"

    # 2) Larger ragged batch forced onto the tiled "parallel" grid path
    #    (3 tiles of 128 lanes, last tile overhangs B=300).
    B2 = 300
    x2 = jax.random.normal(k_x2, (B2, OBS), jnp.float32)
    out2 = jax.block_until_ready(
        network_critic_forward(x2, w1, b1, w2, b2, b_tile=128)
    )
    assert out2.shape == (B2, 1)
    assert jnp.allclose(out2, ref_fn(x2), atol=1e-5), "tiled-batch mismatch"

    print("KERNEL_OK")
</pallas_src>

<mosaic_0001>
module attributes {stable_mosaic.version = 11 : i64} {
  func.func @critic_kernel(%arg0: memref<4x8xf32, #tpu.memory_space<vmem>>, %arg1: memref<64x4xf32, #tpu.memory_space<vmem>>, %arg2: memref<64x1xf32, #tpu.memory_space<vmem>>, %arg3: memref<1x64xf32, #tpu.memory_space<vmem>>, %arg4: memref<1xf32, #tpu.memory_space<smem>>, %arg5: memref<1x8xf32, #tpu.memory_space<vmem>>) attributes {dimension_semantics = [], scalar_prefetch = 0 : i64, scratch_operands = 0 : i64, tpu.core_type = #tpu.core_type<tc>} {
    %c0 = arith.constant 0 : index
    %c0_0 = arith.constant 0 : index
    %0 = vector.load %arg0[%c0, %c0_0] : memref<4x8xf32, #tpu.memory_space<vmem>>, vector<4x8xf32>
    %c0_1 = arith.constant 0 : index
    %c0_2 = arith.constant 0 : index
    %1 = vector.load %arg1[%c0_1, %c0_2] : memref<64x4xf32, #tpu.memory_space<vmem>>, vector<64x1xf32>
    %2 = vector.extract_strided_slice %0 {offsets = [0, 0], sizes = [1, 8], strides = [1, 1]} : vector<4x8xf32> to vector<1x8xf32>
    %3 = vector.broadcast %1 : vector<64x1xf32> to vector<64x8xf32>
    %4 = vector.broadcast %2 : vector<1x8xf32> to vector<64x8xf32>
    %5 = arith.mulf %3, %4 : vector<64x8xf32>
    %c0_3 = arith.constant 0 : index
    %c1 = arith.constant 1 : index
    %6 = vector.load %arg1[%c0_3, %c1] : memref<64x4xf32, #tpu.memory_space<vmem>>, vector<64x1xf32>
    %7 = vector.extract_strided_slice %0 {offsets = [1, 0], sizes = [1, 8], strides = [1, 1]} : vector<4x8xf32> to vector<1x8xf32>
    %8 = vector.broadcast %6 : vector<64x1xf32> to vector<64x8xf32>
    %9 = vector.broadcast %7 : vector<1x8xf32> to vector<64x8xf32>
    %10 = arith.mulf %8, %9 : vector<64x8xf32>
    %11 = arith.addf %5, %10 : vector<64x8xf32>
    %c0_4 = arith.constant 0 : index
    %c2 = arith.constant 2 : index
    %12 = vector.load %arg1[%c0_4, %c2] : memref<64x4xf32, #tpu.memory_space<vmem>>, vector<64x1xf32>
    %13 = vector.extract_strided_slice %0 {offsets = [2, 0], sizes = [1, 8], strides = [1, 1]} : vector<4x8xf32> to vector<1x8xf32>
    %14 = vector.broadcast %12 : vector<64x1xf32> to vector<64x8xf32>
    %15 = vector.broadcast %13 : vector<1x8xf32> to vector<64x8xf32>
    %16 = arith.mulf %14, %15 : vector<64x8xf32>
    %17 = arith.addf %11, %16 : vector<64x8xf32>
    %c0_5 = arith.constant 0 : index
    %c3 = arith.constant 3 : index
    %18 = vector.load %arg1[%c0_5, %c3] : memref<64x4xf32, #tpu.memory_space<vmem>>, vector<64x1xf32>
    %19 = vector.extract_strided_slice %0 {offsets = [3, 0], sizes = [1, 8], strides = [1, 1]} : vector<4x8xf32> to vector<1x8xf32>
    %20 = vector.broadcast %18 : vector<64x1xf32> to vector<64x8xf32>
    %21 = vector.broadcast %19 : vector<1x8xf32> to vector<64x8xf32>
    %22 = arith.mulf %20, %21 : vector<64x8xf32>
    %23 = arith.addf %17, %22 : vector<64x8xf32>
    %c0_6 = arith.constant 0 : index
    %c0_7 = arith.constant 0 : index
    %24 = vector.load %arg2[%c0_6, %c0_7] : memref<64x1xf32, #tpu.memory_space<vmem>>, vector<64x1xf32>
    %25 = vector.broadcast %24 : vector<64x1xf32> to vector<64x8xf32>
    %26 = arith.addf %23, %25 : vector<64x8xf32>
    %27 = math.tanh %26 : vector<64x8xf32>
    %c0_8 = arith.constant 0 : index
    %c0_9 = arith.constant 0 : index
    %28 = vector.load %arg3[%c0_8, %c0_9] : memref<1x64xf32, #tpu.memory_space<vmem>>, vector<1x64xf32>
    %cst = arith.constant dense<0.000000e+00> : vector<1x8xf32>
    %29 = tpu.matmul %28, %27, %cst {dimension_numbers = #tpu.dot_dimension_numbers<[1], [0], [0], [1], [0, 0, 1, 1], [], []>} : vector<1x64xf32>, vector<64x8xf32>, vector<1x8xf32> -> vector<1x8xf32>
    %c0_10 = arith.constant 0 : index
    %30 = memref.load %arg4[%c0_10] : memref<1xf32, #tpu.memory_space<smem>>
    %31 = vector.broadcast %30 : f32 to vector<1x8xf32>
    %32 = arith.addf %29, %31 : vector<1x8xf32>
    %c0_11 = arith.constant 0 : index
    %c0_12 = arith.constant 0 : index
    %33 = vector.load %arg5[%c0_11, %c0_12] : memref<1x8xf32, #tpu.memory_space<vmem>>, vector<1x8xf32>
    tpu.vector_store %arg5[%c0_11, %c0_12], %32 {strides = array<i32>} : memref<1x8xf32, #tpu.memory_space<vmem>>, vector<1x8xf32>,
    return
  }
}

</mosaic_0001>

<bundles_post_ra>
// kernel: tpu_custom_call.1
= control target key start
LH: loop header
LB: loop body
LE: loop exit
PB: predicated region body
PF: predicated region fallthrough
CT: control target
= control target key end

     0   :  { %v497_v2 = vmov 2   ;;  %v498_v3 = vmov 0   ;;  %s670_s0 = inlined_call_operand.vmem [shape: f32[4,8], index: 0, kind: input, shape index: {}]   ;;  %s671_s1 = inlined_call_operand.vmem [shape: f32[64,4], index: 1, kind: input, shape index: {}]   ;;  %s672_s2 = inlined_call_operand.vmem [shape: f32[64,1], index: 2, kind: input, shape index: {}]   ;;  %s673_s3 = inlined_call_operand.vmem [shape: f32[1,64], index: 3, kind: input, shape index: {}]   ;;  %s674_s4 = inlined_call_operand.<no memory space> [shape: f32[1], index: 4, kind: input, shape index: {}]   ;;  %s675_s5 = inlined_call_operand.hbm [shape: f32[1,8], index: 5, kind: output, shape index: {}]  }
   0x1   :  { %v29_v0 = vld [vmem:[%s671_s1 + $0x30] sm:$0xff]  ;;  %v28_v1 = vld [vmem:[%s671_s1 + $0x28] sm:$0xff]  ;;  %439 = vset.pattern.permute.xlu0 %v497_v2  ;;  %432 = vset.pattern.permute.xlu1 %v498_v3  ;;  %v26_v4 = vld [vmem:[%s671_s1 + $0x18] sm:$0xff] }
   0x2   :  { %63 = vperm.xlu1 %432, %v29_v0   ;;  %156 = vperm.xlu0 %439, %v28_v1  }
   0x3   :  { %11 = vsyncpa [#allocation4], 0  ;;  %v499_v5 = vmov 1   ;;  %v30_v6 = vld [vmem:[%s671_s1 + $0x38] sm:$0xff]  ;;  %v500_v7 = vmov 3   ;;  %v27_v8 = vld [vmem:[%s671_s1 + $0x20] sm:$0xff]  ;;  %v71_v29 = vlaneseq }
   0x4   :  { %v23_v9 = vld [vmem:[%s671_s1] sm:$0xff]  ;;  %v246_v10 = vld [vmem:[%s672_s2 + $0x38] sm:$0xff]  ;;  %v24_v11 = vld [vmem:[%s671_s1 + $0x8] sm:$0xff]  ;;  %v501_v14 = vmov 0.0   ;;  %vm502_vm0 = vmmov 0   ;;  %vm306_vm1 = vcmask 523264  }
   0x5   :  { %v243_v12 = vld [vmem:[%s672_s2 + $0x20] sm:$0xff]  ;;  %v242_v13 = vld [vmem:[%s672_s2 + $0x18] sm:$0xff]  ;;  %406 = vmatprep.subr.mxu0 %v501_v14  ;;  %v25_v15 = vld [vmem:[%s671_s1 + $0x10] sm:$0xff]  ;;  %422 = vmatprep.mubr.msk.f32.mxu0 %vm502_vm0, %v501_v14  ;;  %v72_v32 = vshrl.u32 %v71_v29, 7  ;;  %s503_s28 = smov [#allocation3]   ;;  %vm380_vm2 = vcmask 57344  }
   0x6   :  { %433 = vset.pattern.permute.xlu1 %v499_v5  ;;  %148 = vperm.xlu0 %439, %v26_v4   ;;  %v241_v16 = vld [vmem:[%s672_s2 + $0x10] sm:$0xff]  ;;  %v239_v17 = vld [vmem:[%s672_s2] sm:$0xff]  ;;  %v244_v19 = vld [vmem:[%s672_s2 + $0x28] sm:$0xff]  ;;  %s388_s29 = sshll.u32 %s503_s28, 4  ;;  %s389_s29 = int_to_ptr.vmem [resolvable:$true] %s388_s29 }
   0x7   :  { %108 = vperm.xlu1 %433, %v29_v0   ;;  %v245_v18 = vld [vmem:[%s672_s2 + $0x30] sm:$0xff]  ;;  %v240_v20 = vld [vmem:[%s672_s2 + $0x8] sm:$0xff]  ;;  %v117_v34 = vsub.s32 1, %v72_v32  ;;  %v73_v36 = vsub.s32 0, %v72_v32  ;;  %v169_v37 = vsub.s32 2, %v72_v32  ;;  %v221_v38 = vsub.s32 3, %v72_v32  ;;  %p480_p1 = scmp.lt.s32.totalorder %s389_s29, %s389_s29 }
   0x8   :  { %v22_v40 = vld [vmem:[%s670_s0] sm:$0xf]  ;;  %s475_s30 = scalar_lea.vmem %s389_s29, 16 }
   0x9   :  { %v612_v41 = vrot.slane %v22_v40, %v117_v34  ;;  %v614_v42 = vrot.slane %v22_v40, %v73_v36  ;;  %v616_v43 = vrot.slane %v22_v40, %v169_v37  ;;  %v618_v44 = vrot.slane %v22_v40, %v221_v38  ;;  %p476_p0 = scmp.ne.s32.totalorder %s389_s29, %s475_s30 }
   0xa   :  { %446 = vset.pattern.permute.xlu0 %v500_v7 }
   0xb   :  { %434 = vset.pattern.permute.xlu1 %v497_v2  ;;  %216 = vperm.xlu0 %446, %v30_v6  }
   0xc   :  { %164 = vperm.xlu1 %434, %v30_v6  }
   0xf   :  { %200 = vperm.xlu0 %446, %v26_v4  }
  0x10   :  { %435 = vset.pattern.permute.xlu1 %v499_v5 }
  0x11   :  { %104 = vperm.xlu1 %435, %v28_v1  }
  0x13   :  { %451 = vset.pattern.permute.xlu0 %v499_v5 }
  0x14   :  { %112 = vperm.xlu0 %451, %v30_v6  }
  0x15   :  { %436 = vset.pattern.permute.xlu1 %v497_v2 }
  0x16   :  { %160 = vperm.xlu1 %436, %v29_v0  }
  0x18   :  { %96 = vperm.xlu0 %451, %v26_v4  }
  0x1a   :  { %437 = vset.pattern.permute.xlu1 %v498_v3 }
  0x1b   :  { %53 = vperm.xlu1 %437, %v27_v8  }
  0x1c   :  { %84 = vperm.xlu0 %451, %v23_v9  }
  0x1f   :  { %438 = vset.pattern.permute.xlu1 %v499_v5 }
  0x20   :  { %100 = vperm.xlu1 %438, %v27_v8   ;;  %453 = vset.pattern.permute.xlu0 %v498_v3 }
  0x21   :  { %68 = vperm.xlu0 %453, %v30_v6  }
  0x24   :  { %440 = vset.pattern.permute.xlu1 %v500_v7 }
  0x25   :  { %212 = vperm.xlu1 %440, %v29_v0   ;;  %58 = vperm.xlu0 %453, %v28_v1  }
  0x29   :  { %441 = vset.pattern.permute.xlu1 %v498_v3  ;;  %284 = vperm.xlu0 %453, %v246_v10  }
  0x2a   :  { %48 = vperm.xlu1 %441, %v26_v4  }
  0x2d   :  { %38 = vperm.xlu0 %453, %v24_v11  }
  0x2e   :  { %442 = vset.pattern.permute.xlu1 %v497_v2 }
  0x2f   :  { %152 = vperm.xlu1 %442, %v27_v8  }
  0x31   :  { %269 = vperm.xlu0 %453, %v243_v12  }
  0x33   :  { %443 = vset.pattern.permute.xlu1 %v500_v7 }
  0x34   :  { %208 = vperm.xlu1 %443, %v28_v1  }
  0x35   :  { %264 = vperm.xlu0 %453, %v242_v13  }
  0x38   :  { %444 = vset.pattern.permute.xlu1 %v498_v3 }
  0x39   :  { %43 = vperm.xlu1 %444, %v25_v15   ;;  %259 = vperm.xlu0 %453, %v241_v16  }
  0x3d   :  { %445 = vset.pattern.permute.xlu1 %v499_v5  ;;  %249 = vperm.xlu0 %453, %v239_v17  }
  0x3e   :  { %92 = vperm.xlu1 %445, %v25_v15  }
  0x42   :  { %447 = vset.pattern.permute.xlu1 %v500_v7 }
  0x43   :  { %204 = vperm.xlu1 %447, %v27_v8  }
  0x47   :  { %448 = vset.pattern.permute.xlu1 %v498_v3 }
  0x48   :  { %279 = vperm.xlu1 %448, %v245_v18  }
  0x4c   :  { %449 = vset.pattern.permute.xlu1 %v499_v5 }
  0x4d   :  { %88 = vperm.xlu1 %449, %v24_v11  }
  0x51   :  { %450 = vset.pattern.permute.xlu1 %v497_v2 }
  0x52   :  { %144 = vperm.xlu1 %450, %v25_v15  }
  0x56   :  { %452 = vset.pattern.permute.xlu1 %v498_v3 }
  0x57   :  { %274 = vperm.xlu1 %452, %v244_v19  }
  0x5b   :  { %33 = vperm.xlu1 %452, %v23_v9  }
  0x5f   :  { %454 = vset.pattern.permute.xlu1 %v497_v2 }
  0x60   :  { %140 = vperm.xlu1 %454, %v24_v11  }
  0x64   :  { %455 = vset.pattern.permute.xlu1 %v500_v7 }
  0x65   :  { %196 = vperm.xlu1 %455, %v25_v15  }
  0x69   :  { %456 = vset.pattern.permute.xlu1 %v497_v2 }
  0x6a   :  { %136 = vperm.xlu1 %456, %v23_v9  }
  0x6e   :  { %457 = vset.pattern.permute.xlu1 %v500_v7 }
  0x6f   :  { %192 = vperm.xlu1 %457, %v24_v11  }
  0x73   :  { %188 = vperm.xlu1 %457, %v23_v9  }
  0x77   :  { %458 = vset.pattern.permute.xlu1 %v498_v3 }
  0x78   :  { %254 = vperm.xlu1 %458, %v240_v20  }
  0x7d   :  { %v64_v21 = vpop.permute.xlu1 %63  ;;  %v604_v22 = vpop.permute.xlu0 %156 }
  0x7e   :  { %v81_v8 = vmul.f32 %v614_v42, %v64_v21 }
  0x81   :  { %v149_v23 = vpop.permute.xlu0 %148 }
  0x82   :  { %v109_v24 = vpop.permute.xlu1 %108  ;;  %v174_v60 = vmul.f32 %v616_v43, %v149_v23 }
  0x83   :  { %v125_v7 = vmul.f32 %v612_v41, %v109_v24 }
  0x85   :  { %v133_v10 = vadd.f32 %v125_v7, %v81_v8 }
  0x86   :  { %v217_v25 = vpop.permute.xlu0 %216 }
  0x87   :  { %v165_v26 = vpop.permute.xlu1 %164  ;;  %v230_v50 = vmul.f32 %v618_v44, %v217_v25 }
  0x88   :  { %v178_v49 = vmul.f32 %v616_v43, %v165_v26  ;;  %v176_v26 = vmul.f32 %v616_v43, %v604_v22 }
  0x8a   :  { %v201_v27 = vpop.permute.xlu0 %200 }
  0x8b   :  { %v226_v62 = vmul.f32 %v618_v44, %v201_v27 }
  0x8c   :  { %v105_v28 = vpop.permute.xlu1 %104 }
  0x8d   :  { %v124_v24 = vmul.f32 %v612_v41, %v105_v28 }
  0x8f   :  { %v113_v30 = vpop.permute.xlu0 %112 }
  0x90   :  { %v126_v45 = vmul.f32 %v612_v41, %v113_v30 }
  0x91   :  { %v161_v31 = vpop.permute.xlu1 %160 }
  0x92   :  { %v177_v9 = vmul.f32 %v616_v43, %v161_v31 }
  0x93   :  { %v97_v33 = vpop.permute.xlu0 %96 }
  0x94   :  { %v122_v56 = vmul.f32 %v612_v41, %v97_v33  ;;  %v185_v13 = vadd.f32 %v177_v9, %v133_v10 }
  0x96   :  { %v54_v35 = vpop.permute.xlu1 %53 }
  0x97   :  { %v607_v39 = vpop.permute.xlu0 %84  ;;  %v79_v21 = vmul.f32 %v614_v42, %v54_v35 }
  0x9b   :  { %v101_v46 = vpop.permute.xlu1 %100 }
  0x9c   :  { %v69_v47 = vpop.permute.xlu0 %68  ;;  %v123_v19 = vmul.f32 %v612_v41, %v101_v46 }
  0x9d   :  { %v82_v48 = vmul.f32 %v614_v42, %v69_v47 }
  0x9e   :  { %v131_v27 = vadd.f32 %v123_v19, %v79_v21  ;;  %v305_v19 = vstv %s674_s4 }
  0x9f   :  { %v134_v51 = vadd.f32 %v126_v45, %v82_v48 }
  0xa0   :  { %v213_v52 = vpop.permute.xlu1 %212  ;;  %v59_v53 = vpop.permute.xlu0 %58 }
  0xa1   :  { %v186_v54 = vadd.f32 %v178_v49, %v134_v51  ;;  %v229_v11 = vmul.f32 %v618_v44, %v213_v52  ;;  %v80_v20 = vmul.f32 %v614_v42, %v59_v53 }
  0xa3   :  { %v238_v55 = vadd.f32 %v230_v50, %v186_v54  ;;  %v237_v15 = vadd.f32 %v229_v11, %v185_v13  ;;  %v132_v29 = vadd.f32 %v124_v24, %v80_v20 }
  0xa4   :  { %v285_v57 = vpop.permute.xlu0 %284 }
  0xa5   :  { %v294_v58 = vadd.f32 %v285_v57, %v238_v55  ;;  %v49_v59 = vpop.permute.xlu1 %48  ;;  %v184_v37 = vadd.f32 %v176_v26, %v132_v29 }
  0xa6   :  { %v78_v61 = vmul.f32 %v614_v42, %v49_v59 }
  0xa7   :  { %459 = vtanh.f32 %v294_v58 }
  0xa8   :  { %v130_v63 = vadd.f32 %v122_v56, %v78_v61  ;;  %v39_v18 = vpop.permute.xlu0 %38 }
  0xaa   :  { %v153_v0 = vpop.permute.xlu1 %152  ;;  %v182_v1 = vadd.f32 %v174_v60, %v130_v63 }
  0xab   :  { %v175_v25 = vmul.f32 %v616_v43, %v153_v0  ;;  %v76_v0 = vmul.f32 %v614_v42, %v39_v18 }
  0xac   :  { %v234_v2 = vadd.f32 %v226_v62, %v182_v1  ;;  %v270_v31 = vpop.permute.xlu0 %269 }
  0xad   :  { %v183_v32 = vadd.f32 %v175_v25, %v131_v27 }
  0xaf   :  { %v209_v3 = vpop.permute.xlu1 %208 }
  0xb0   :  { %v228_v33 = vmul.f32 %v618_v44, %v209_v3  ;;  %v265_v28 = vpop.permute.xlu0 %264  ;;  %v119_v3 = vmul.f32 %v612_v41, %v607_v39 }
  0xb1   :  { %v290_v47 = vadd.f32 %v265_v28, %v234_v2 }
  0xb2   :  { %v236_v38 = vadd.f32 %v228_v33, %v184_v37 }
  0xb4   :  { %v460_v4 = vpop.eup %459  ;;  %v44_v5 = vpop.permute.xlu1 %43 }
  0xb5   :  { %407 = vmatpush3.msra.mxu0 %v460_v4  ;;  %v77_v50 = vmul.f32 %v614_v42, %v44_v5  ;;  %v260_v59 = vpop.permute.xlu0 %259 }
  0xb6   :  { %408 = vmatprep.subr.mxu0 %v501_v14 }
  0xb9   :  { %v93_v6 = vpop.permute.xlu1 %92 }
  0xba   :  { %v121_v48 = vmul.f32 %v612_v41, %v93_v6 }
  0xbc   :  { %v129_v52 = vadd.f32 %v121_v48, %v77_v50 }
  0xbe   :  { %v205_v12 = vpop.permute.xlu1 %204 }
  0xbf   :  { %v227_v30 = vmul.f32 %v618_v44, %v205_v12 }
  0xc1   :  { %v235_v36 = vadd.f32 %v227_v30, %v183_v32 }
  0xc3   :  { %v280_v16 = vpop.permute.xlu1 %279  ;;  %v291_v45 = vadd.f32 %v270_v31, %v235_v36 }
  0xc4   :  { %v293_v17 = vadd.f32 %v280_v16, %v237_v15  ;;  %v250_v15 = vpop.permute.xlu0 %249 }
  0xc6   :  { %461 = vtanh.f32 %v293_v17 }
  0xc8   :  { %v89_v23 = vpop.permute.xlu1 %88 }
  0xc9   :  { %v120_v1 = vmul.f32 %v612_v41, %v89_v23 }
  0xcb   :  { %v128_v7 = vadd.f32 %v120_v1, %v76_v0 }
  0xcd   :  { %v145_v34 = vpop.permute.xlu1 %144 }
  0xce   :  { %v173_v51 = vmul.f32 %v616_v43, %v145_v34 }
  0xd0   :  { %v181_v54 = vadd.f32 %v173_v51, %v129_v52 }
  0xd2   :  { %v275_v40 = vpop.permute.xlu1 %274 }
  0xd3   :  { %v462_v35 = vpop.eup %461  ;;  %v292_v46 = vadd.f32 %v275_v40, %v236_v38 }
  0xd4   :  { %409 = vmatpush3.msra.mxu0 %v462_v35 }
  0xd5   :  { %463 = vtanh.f32 %v292_v46  ;;  %410 = vmatprep.subr.mxu0 %v501_v14 }
  0xd6   :  { %v34_v22 = vpop.permute.xlu1 %33  ;;  %465 = vtanh.f32 %v291_v45 }
  0xd7   :  { %467 = vtanh.f32 %v290_v47  ;;  %v75_v63 = vmul.f32 %v614_v42, %v34_v22 }
  0xd9   :  { %v127_v6 = vadd.f32 %v119_v3, %v75_v63 }
  0xdb   :  { %v141_v49 = vpop.permute.xlu1 %140 }
  0xdc   :  { %v172_v5 = vmul.f32 %v616_v43, %v141_v49 }
  0xde   :  { %v180_v12 = vadd.f32 %v172_v5, %v128_v7 }
  0xe0   :  { %v197_v53 = vpop.permute.xlu1 %196 }
  0xe1   :  { %v225_v55 = vmul.f32 %v618_v44, %v197_v53 }
  0xe2   :  { %v464_v56 = vpop.eup %463 }
  0xe3   :  { %v233_v57 = vadd.f32 %v225_v55, %v181_v54  ;;  %411 = vmatpush3.msra.mxu0 %v464_v56  ;;  %v466_v58 = vpop.eup %465 }
  0xe4   :  { %412 = vmatprep.subr.mxu0 %v501_v14  ;;  %v468_v62 = vpop.eup %467 }
  0xe5   :  { %v289_v60 = vadd.f32 %v260_v59, %v233_v57  ;;  %v137_v61 = vpop.permute.xlu1 %136  ;;  %413 = vmatpush3.msra.mxu0 %v466_v58 }
  0xe6   :  { %414 = vmatprep.subr.mxu0 %v501_v14  ;;  %v171_v4 = vmul.f32 %v616_v43, %v137_v61  ;;  %v303_v43 = vld [vmem:[%s673_s3] sm:$0x1]  ;;  %s479_s3 = scalar_lea.vmem %s389_s29, 32 }
  0xe7   :  { %469 = vtanh.f32 %v289_v60  ;;  %415 = vmatpush3.msra.mxu0 %v468_v62  ;;  %p481_p2 = scmp.lt.s32.totalorder %s479_s3, %s475_s30 }
  0xe8   :  { %416 = vmatprep.subr.mxu0 %v501_v14  ;;  %v179_v10 = vadd.f32 %v171_v4, %v127_v6 }
  0xe9   :  { %p482_p3 = por %p481_p2, %p480_p1 }
  0xea   :  { %v193_v2 = vpop.permute.xlu1 %192 }
  0xeb   :  { %v224_v8 = vmul.f32 %v618_v44, %v193_v2  ;;  %p483_p4 = pnand %p482_p3, %p476_p0 }
  0xed   :  { %v232_v13 = vadd.f32 %v224_v8, %v180_v12 }
  0xee   :  { %v189_v9 = vpop.permute.xlu1 %188 }
  0xef   :  { %v223_v11 = vmul.f32 %v618_v44, %v189_v9 }
  0xf1   :  { %v231_v42 = vadd.f32 %v223_v11, %v179_v10 }
  0xf3   :  { %v255_v16 = vpop.permute.xlu1 %254  ;;  %v287_v18 = vadd.f32 %v250_v15, %v231_v42 }
  0xf4   :  { %v470_v17 = vpop.eup %469  ;;  %v288_v39 = vadd.f32 %v255_v16, %v232_v13 }
  0xf5   :  { %417 = vmatpush3.msra.mxu0 %v470_v17 }
  0xf6   :  { %471 = vtanh.f32 %v288_v39  ;;  %418 = vmatprep.subr.mxu0 %v501_v14 }
  0xf7   :  { %473 = vtanh.f32 %v287_v18 }
 0x103   :  { %v472_v41 = vpop.eup %471 }
 0x104   :  { %419 = vmatpush3.msra.mxu0 %v472_v41  ;;  %v474_v44 = vpop.eup %473 }
 0x105   :  { %420 = vmatprep.subr.mxu0 %v501_v14 }
 0x106   :  { %421 = vmatpush3.msra.mxu0 %v474_v44 }
 0x107   :  { %423 = vmatmul.mubr.msk.f32.vlgmr.msra.gmra.mxu0 %vm306_vm1, %v303_v43 }
 0x1c7   :  { %v376_v20 = vpop.f32.mrf.mxu0 }
 0x1c8   :  { %v377_v23 = vadd.f32 %v376_v20, %v305_v19 }
 0x1c9   :  { %v424_v24 = vpop.f32.mrf.mxu0 }
 0x1ca   :  { %381 = vst.msk [vmem:[#allocation3] sm:$0x1] %vm380_vm2, %v377_v23 }
 0x1cb   :  { %486 = shalt.err (!%p483_p4)
}
 0x1cc   :  { %391 = dma.vmem_to_hbm [thread:$0]  %s389_s29, 16, %s675_s5, [#allocation4]  }
 0x1cd   :  { %495 = dma.done.wait [#allocation4], 16  }
 0x1ce   :  { %496 = vsyncadd [#allocation4], 4294967280 }
 0x1cf   :  { %395 = vsyncpa [#allocation4], 1 }

</bundles_post_ra>
